<compile_context>
chip_gen: v5e
topology: v5e:2x2
jax: 0.10.0
libtpu: 0.0.40
codegen_flags: <defaults>
</compile_context>

<pallas_src>
import jax
import jax.numpy as jnp
from jax.experimental import pallas as pl
from jax.experimental.pallas import tpu as pltpu


def _round_up(n: int, m: int) -> int:
    return ((n + m - 1) // m) * m


def _vmem_limit_bytes() -> int:
    """Per-generation VMEM budget (~75% of physical capacity)."""
    try:
        cap = pltpu.get_tpu_info().vmem_capacity_bytes
        return int(cap * 0.75)
    except Exception:
        # Conservative fallback if hardware query is unavailable.
        return 32 * 1024 * 1024


def _resident_spec(shape):
    """Weight/bias spec: constant index_map, single-buffered (resident in VMEM)."""
    idx = lambda i: (0, 0)
    try:
        return pl.BlockSpec(shape, idx, pipeline_mode=pl.Buffered(1))
    except (TypeError, AttributeError):
        # Older jax without pipeline_mode: fall back to default buffering.
        return pl.BlockSpec(shape, idx)


def text_projection_kernel(x_ref, w1_ref, b1_ref, w2_ref, b2_ref, o_ref):
    # x_ref : (tile_b, D_in)   w1_ref : (D_in, D_hid)   b1_ref : (1, D_hid)
    # w2_ref: (D_hid, D_out)   b2_ref : (1, D_out)      o_ref  : (tile_b, D_out)
    x = x_ref[...].astype(jnp.float32)                      # module does x.float()

    # Linear 1 + ReLU (MXU matmul, f32 accumulate; ReLU on the VPU)
    h = jnp.dot(x, w1_ref[...], preferred_element_type=jnp.float32) + b1_ref[...]
    h = jnp.maximum(h, 0.0)

    # Linear 2
    y = jnp.dot(h, w2_ref[...], preferred_element_type=jnp.float32) + b2_ref[...]

    o_ref[...] = y.astype(o_ref.dtype)


def text_projection_head(x, w1, b1, w2, b2, *, tile_b: int = 512):
    """Pallas forward pass of TextProjectionHead.

    x : (B, D_in) any float dtype (cast to f32 inside the kernel, as in torch)
    w1: (D_in, D_hid), b1: (1, D_hid)
    w2: (D_hid, D_out), b2: (1, D_out)
    returns (B, D_out) float32
    """
    B, D_in = x.shape
    D_hid = w1.shape[1]
    D_out = w2.shape[1]
    assert w1.shape == (D_in, D_hid)
    assert w2.shape == (D_hid, D_out)
    assert b1.shape == (1, D_hid) and b2.shape == (1, D_out)

    # Lane-dense columns: pad hidden/output dims up to multiples of 128 so MXU
    # columns are filled and the output store is an unmasked vst.  Zero-padded
    # weight columns/rows are exact (ReLU(0)=0 contributes nothing); padded
    # output columns are sliced off below.  (In production store the weights
    # pre-padded so this is a no-op.)
    D_hid_p = _round_up(D_hid, 128)
    D_out_p = _round_up(D_out, 128)
    if D_hid_p != D_hid:
        w1 = jnp.pad(w1, ((0, 0), (0, D_hid_p - D_hid)))
        b1 = jnp.pad(b1, ((0, 0), (0, D_hid_p - D_hid)))
        w2 = jnp.pad(w2, ((0, D_hid_p - D_hid), (0, 0)))
    if D_out_p != D_out:
        w2 = jnp.pad(w2, ((0, 0), (0, D_out_p - D_out)))
        b2 = jnp.pad(b2, ((0, 0), (0, D_out_p - D_out)))

    # --- VMEM budget -> batch tile ------------------------------------------
    # Weights stay resident once (single-buffered); x / out tiles are
    # double-buffered by the pipeline; the f32 intermediate is (tile_b, D_hid).
    vmem_limit = _vmem_limit_bytes()
    w_bytes = 4 * (D_in * D_hid_p + D_hid_p + D_hid_p * D_out_p + D_out_p)
    budget = int(vmem_limit * 0.6) - w_bytes            # headroom for temporaries
    # NOTE: if w_bytes ever exceeds ~half the budget (very large input_dim on
    # v7x's 64 MiB), split D_in with a second "arbitrary" grid axis and an f32
    # accumulator scratch instead of keeping w1 monolithic and resident.

    def _tiles_bytes(tb):
        return (2 * tb * D_in * x.dtype.itemsize        # double-buffered x tiles
                + 2 * tb * D_out_p * 4                  # double-buffered out tiles
                + tb * D_hid_p * 4)                     # f32 intermediate

    # Keep the batch tile a multiple of 256 (v6e/v7x 2x256^2 MXU M dimension),
    # shrink by 256 until it fits the VMEM budget; small batches use one
    # sublane-rounded tile.
    tile_b = min(tile_b, _round_up(B, 8))
    if tile_b >= 256:
        tile_b = max(256, (tile_b // 256) * 256)
        while tile_b > 256 and _tiles_bytes(tile_b) > budget:
            tile_b -= 256

    grid = (pl.cdiv(B, tile_b),)   # ragged last block: Pallas masks the store

    out = pl.pallas_call(
        text_projection_kernel,
        out_shape=jax.ShapeDtypeStruct((B, D_out_p), jnp.float32),
        grid=grid,
        in_specs=[
            # per-step batch tile of the input (pipelined / double-buffered)
            pl.BlockSpec((tile_b, D_in), lambda i: (i, 0)),
            # weights & biases: resident, single-buffered
            _resident_spec((D_in, D_hid_p)),
            _resident_spec((1, D_hid_p)),
            _resident_spec((D_hid_p, D_out_p)),
            _resident_spec((1, D_out_p)),
        ],
        out_specs=pl.BlockSpec((tile_b, D_out_p), lambda i: (i, 0)),
        compiler_params=pltpu.CompilerParams(
            # batch steps are independent; on v7x consider pltpu.CORE_PARALLEL
            # on this axis if plain "parallel" does not shard across the 2 TCs.
            dimension_semantics=("parallel",),
            vmem_limit_bytes=vmem_limit,
        ),
    )(x, w1, b1, w2, b2)

    if D_out_p != D_out:
        out = out[:, :D_out]
    return out


def reference(x, w1, b1, w2, b2):
    """Pure-JAX reference mirroring the PyTorch forward exactly."""
    x = x.astype(jnp.float32)
    h = jnp.maximum(x @ w1 + b1[0], 0.0)
    return h @ w2 + b2[0]


if __name__ == "__main__":
    # Small shapes consistent with the module's forward: x is (batch, input_dim).
    B, D_IN, D_OUT = 2, 32, 64

    key = jax.random.PRNGKey(0)
    k0, k1, k2, k3, k4 = jax.random.split(key, 5)

    x = jax.random.normal(k0, (B, D_IN), dtype=jnp.float32)

    # Deterministic synthetic parameters (shapes from the nn.Linear defs,
    # stored (in, out) so the kernel computes x @ W + b).
    w1 = jax.random.normal(k1, (D_IN, D_OUT), dtype=jnp.float32) * 0.1
    b1 = jax.random.normal(k2, (1, D_OUT), dtype=jnp.float32) * 0.1
    w2 = jax.random.normal(k3, (D_OUT, D_OUT), dtype=jnp.float32) * 0.1
    b2 = jax.random.normal(k4, (1, D_OUT), dtype=jnp.float32) * 0.1

    out = text_projection_head(x, w1, b1, w2, b2)
    out = jax.block_until_ready(out)

    ref = reference(x, w1, b1, w2, b2)
    assert out.shape == (B, D_OUT)
    assert jnp.allclose(out, ref, atol=1e-5, rtol=1e-5), "mismatch vs reference"

    print("KERNEL_OK")
</pallas_src>

<mosaic_0001>
module attributes {stable_mosaic.version = 11 : i64} {
  func.func @text_projection_kernel(%arg0: i32, %arg1: memref<8x32xf32, #tpu.memory_space<vmem>>, %arg2: memref<32x128xf32, #tpu.memory_space<vmem>>, %arg3: memref<1x128xf32, #tpu.memory_space<vmem>>, %arg4: memref<128x128xf32, #tpu.memory_space<vmem>>, %arg5: memref<1x128xf32, #tpu.memory_space<vmem>>, %arg6: memref<8x128xf32, #tpu.memory_space<vmem>>) attributes {dimension_semantics = [#tpu.dimension_semantics<parallel>], iteration_bounds = array<i64: 1>, scalar_prefetch = 0 : i64, scratch_operands = 0 : i64, tpu.core_type = #tpu.core_type<tc>, window_params = [{transform_indices = @transform_0, window_bounds = array<i64: 8, 32>}, {pipeline_mode = #tpu.pipeline_mode<synchronous>, transform_indices = @transform_1, window_bounds = array<i64: 32, 128>}, {pipeline_mode = #tpu.pipeline_mode<synchronous>, transform_indices = @transform_2, window_bounds = array<i64: 1, 128>}, {pipeline_mode = #tpu.pipeline_mode<synchronous>, transform_indices = @transform_3, window_bounds = array<i64: 128, 128>}, {pipeline_mode = #tpu.pipeline_mode<synchronous>, transform_indices = @transform_4, window_bounds = array<i64: 1, 128>}, {transform_indices = @transform_5, window_bounds = array<i64: 8, 128>}]} {
    %c0 = arith.constant 0 : index
    %c0_0 = arith.constant 0 : index
    %0 = vector.load %arg1[%c0, %c0_0] : memref<8x32xf32, #tpu.memory_space<vmem>>, vector<8x32xf32>
    %c0_1 = arith.constant 0 : index
    %c0_2 = arith.constant 0 : index
    %1 = vector.load %arg2[%c0_1, %c0_2] : memref<32x128xf32, #tpu.memory_space<vmem>>, vector<32x128xf32>
    %cst = arith.constant dense<0.000000e+00> : vector<8x128xf32>
    %2 = tpu.matmul %0, %1, %cst {dimension_numbers = #tpu.dot_dimension_numbers<[1], [0], [0], [1], [0, 0, 1, 1], [], []>} : vector<8x32xf32>, vector<32x128xf32>, vector<8x128xf32> -> vector<8x128xf32>
    %c0_3 = arith.constant 0 : index
    %c0_4 = arith.constant 0 : index
    %3 = vector.load %arg3[%c0_3, %c0_4] : memref<1x128xf32, #tpu.memory_space<vmem>>, vector<1x128xf32>
    %4 = vector.broadcast %3 : vector<1x128xf32> to vector<8x128xf32>
    %5 = arith.addf %2, %4 : vector<8x128xf32>
    %cst_5 = arith.constant 0.000000e+00 : f32
    %6 = vector.broadcast %cst_5 : f32 to vector<8x128xf32>
    %7 = arith.maximumf %5, %6 : vector<8x128xf32>
    %c0_6 = arith.constant 0 : index
    %c0_7 = arith.constant 0 : index
    %8 = vector.load %arg4[%c0_6, %c0_7] : memref<128x128xf32, #tpu.memory_space<vmem>>, vector<128x128xf32>
    %cst_8 = arith.constant dense<0.000000e+00> : vector<8x128xf32>
    %9 = tpu.matmul %7, %8, %cst_8 {dimension_numbers = #tpu.dot_dimension_numbers<[1], [0], [0], [1], [0, 0, 1, 1], [], []>} : vector<8x128xf32>, vector<128x128xf32>, vector<8x128xf32> -> vector<8x128xf32>
    %c0_9 = arith.constant 0 : index
    %c0_10 = arith.constant 0 : index
    %10 = vector.load %arg5[%c0_9, %c0_10] : memref<1x128xf32, #tpu.memory_space<vmem>>, vector<1x128xf32>
    %11 = vector.broadcast %10 : vector<1x128xf32> to vector<8x128xf32>
    %12 = arith.addf %9, %11 : vector<8x128xf32>
    %c0_11 = arith.constant 0 : index
    %c0_12 = arith.constant 0 : index
    %13 = vector.load %arg6[%c0_11, %c0_12] : memref<8x128xf32, #tpu.memory_space<vmem>>, vector<8x128xf32>
    tpu.vector_store %arg6[%c0_11, %c0_12], %12 {strides = array<i32>} : memref<8x128xf32, #tpu.memory_space<vmem>>, vector<8x128xf32>,
    return
  }
  func.func @transform_0(%arg0: i32) -> (i32, i32) {
    %c0_i32 = arith.constant 0 : i32
    %c0_i32_0 = arith.constant 0 : i32
    return %arg0, %c0_i32 : i32, i32
  }
  func.func @transform_1(%arg0: i32) -> (i32, i32) {
    %c0_i32 = arith.constant 0 : i32
    %c0_i32_0 = arith.constant 0 : i32
    %c0_i32_1 = arith.constant 0 : i32
    return %c0_i32, %c0_i32_0 : i32, i32
  }
  func.func @transform_2(%arg0: i32) -> (i32, i32) {
    %c0_i32 = arith.constant 0 : i32
    %c0_i32_0 = arith.constant 0 : i32
    %c0_i32_1 = arith.constant 0 : i32
    return %c0_i32, %c0_i32_0 : i32, i32
  }
  func.func @transform_3(%arg0: i32) -> (i32, i32) {
    %c0_i32 = arith.constant 0 : i32
    %c0_i32_0 = arith.constant 0 : i32
    %c0_i32_1 = arith.constant 0 : i32
    return %c0_i32, %c0_i32_0 : i32, i32
  }
  func.func @transform_4(%arg0: i32) -> (i32, i32) {
    %c0_i32 = arith.constant 0 : i32
    %c0_i32_0 = arith.constant 0 : i32
    %c0_i32_1 = arith.constant 0 : i32
    return %c0_i32, %c0_i32_0 : i32, i32
  }
  func.func @transform_5(%arg0: i32) -> (i32, i32) {
    %c0_i32 = arith.constant 0 : i32
    %c0_i32_0 = arith.constant 0 : i32
    return %arg0, %c0_i32 : i32, i32
  }
}

</mosaic_0001>

<bundles_post_ra>
// kernel: tpu_custom_call.1
= control target key start
LH: loop header
LB: loop body
LE: loop exit
PB: predicated region body
PF: predicated region fallthrough
CT: control target
= control target key end

     0   :  { %10 = vsyncpa [#allocation3], 0  ;;  %s338_s0 = inlined_call_operand.hbm [shape: f32[2,32], index: 0, kind: input, shape index: {}]   ;;  %s339_s1 = inlined_call_operand.hbm [shape: f32[32,128], index: 1, kind: input, shape index: {}]   ;;  %s340_s2 = inlined_call_operand.vmem [shape: f32[1,128], index: 2, kind: input, shape index: {}]   ;;  %s341_s3 = inlined_call_operand.hbm [shape: f32[128,128], index: 3, kind: input, shape index: {}]   ;;  %s342_s4 = inlined_call_operand.vmem [shape: f32[1,128], index: 4, kind: input, shape index: {}]   ;;  %s343_s5 = inlined_call_operand.hbm [shape: f32[2,128], index: 5, kind: output, shape index: {}]  }
   0x1   :  { %11 = vsyncpa [#allocation6], 0 }
   0x2   :  { %12 = vsyncpa [#allocation4], 0  ;;  %s30_s20 = sshll.u32 %s339_s1, 4  ;;  %s31_s20 = int_to_ptr.hbm [resolvable:$true] %s30_s20 }
   0x3   :  { %16 = vsyncadd [#allocation3], 96  ;;  %s276_s21 = smov [#allocation5]   ;;  %s17_s25 = sshll.u32 %s338_s0, 4  ;;  %s18_s25 = int_to_ptr.hbm [resolvable:$true] %s17_s25 }
   0x4   :  { %s32_s22 = sshll.u32 %s276_s21, 4  ;;  %s277_s26 = smov 128   ;;  %s33_s22 = int_to_ptr.vmem [resolvable:$true] %s32_s22 }
   0x5   :  { %s278_s27 = smov 8   ;;  %s279_s28 = smov [#allocation2]  }
   0x6   :  { %38 = dma.hbm_to_vmem [thread:$0]  %s31_s20, 512, %s33_s22, [#allocation6], %s277_s26, %s277_s26, %s278_s27  }
   0x7   :  { %s19_s29 = sshll.u32 %s279_s28, 4  ;;  %s280_s30 = smov 32   ;;  %s20_s29 = int_to_ptr.vmem [resolvable:$true] %s19_s29 }
   0x8   :  { %s281_s6 = smov 2   ;;  %s45_s8 = sshll.u32 %s341_s3, 4  ;;  %s46_s8 = int_to_ptr.hbm [resolvable:$true] %s45_s8 }
   0x9   :  { %25 = dma.hbm_to_vmem [thread:$0]  %s18_s25, 32, %s20_s29, [#allocation3], %s280_s30, %s280_s30, %s281_s6  }
   0xa   :  { %s282_s9 = smov [#allocation7]  }
   0xb   :  { %s47_s0 = sshll.u32 %s282_s9, 4  ;;  %s48_s0 = int_to_ptr.vmem [resolvable:$true] %s47_s0 }
   0xc   :  { %53 = dma.hbm_to_vmem [thread:$0]  %s46_s8, 2048, %s48_s0, [#allocation6], %s277_s26, %s277_s26, %s278_s27  }
   0xd   :  { %270 = dma.done.wait [#allocation3], 128  }
   0xe   :  { %271 = vsyncadd [#allocation3], 4294967168 }
   0xf   :  { %272 = dma.done.wait [#allocation6], 2560  }
  0x10   :  { %273 = vsyncadd [#allocation6], 4294964736  ;;  %v72_v0 = vld [vmem:[#allocation5 + $0x18] sm:$0xff]  ;;  %v71_v1 = vld [vmem:[#allocation5 + $0x10] sm:$0xff]  ;;  %vm77_vm0 = vcmask 261120  }
  0x11   :  { %93 = vmatpush.msra.mxu0 %v72_v0  ;;  %v117_v2 = vld [vmem:[#allocation7 + $0x78] sm:$0xff]  ;;  %v70_v3 = vld [vmem:[#allocation5 + $0x8] sm:$0xff]  ;;  %v116_v4 = vld [vmem:[#allocation7 + $0x70] sm:$0xff] }
  0x12   :  { %122 = vmatpush.msra.mxu1 %v117_v2  ;;  %v115_v5 = vld [vmem:[#allocation7 + $0x68] sm:$0xff]  ;;  %v69_v6 = vld [vmem:[#allocation5] sm:$0xff]  ;;  %v68_v7 = vld [vmem:[#allocation2] sm:$0xff] }
  0x13   :  { %94 = vmatpush.msra.mxu0 %v71_v1  ;;  %v114_v8 = vld [vmem:[#allocation7 + $0x60] sm:$0xff]  ;;  %v113_v9 = vld [vmem:[#allocation7 + $0x58] sm:$0xff]  ;;  %v112_v10 = vld [vmem:[#allocation7 + $0x50] sm:$0xff] }
  0x14   :  { %123 = vmatpush.msra.mxu1 %v116_v4  ;;  %v111_v11 = vld [vmem:[#allocation7 + $0x48] sm:$0xff]  ;;  %v110_v12 = vld [vmem:[#allocation7 + $0x40] sm:$0xff]  ;;  %v109_v13 = vld [vmem:[#allocation7 + $0x38] sm:$0xff] }
  0x15   :  { %95 = vmatpush.msra.mxu0 %v70_v3  ;;  %v108_v14 = vld [vmem:[#allocation7 + $0x30] sm:$0xff]  ;;  %v107_v15 = vld [vmem:[#allocation7 + $0x28] sm:$0xff]  ;;  %v106_v16 = vld [vmem:[#allocation7 + $0x20] sm:$0xff] }
  0x16   :  { %124 = vmatpush.msra.mxu1 %v115_v5  ;;  %v105_v17 = vld [vmem:[#allocation7 + $0x18] sm:$0xff]  ;;  %v104_v18 = vld [vmem:[#allocation7 + $0x10] sm:$0xff]  ;;  %v103_v19 = vld [vmem:[#allocation7 + $0x8] sm:$0xff] }
  0x17   :  { %96 = vmatpush.msra.mxu0 %v69_v6  ;;  %v102_v20 = vld [vmem:[#allocation7] sm:$0xff]  ;;  %v172_v21 = vld [vmem:[%s340_s2] ss:$0 sm:$0xff] }
  0x18   :  { %163 = vmatmul.msk.f32.vlgmr.msra.gmra.mxu0 %vm77_vm0, %v68_v7  ;;  %125 = vmatpush.msra.mxu1 %v114_v8  ;;  %v173_v25 = vld [vmem:[%s342_s4] ss:$0 sm:$0xff] }
  0x1a   :  { %126 = vmatpush.msra.mxu1 %v113_v9 }
  0x1c   :  { %127 = vmatpush.msra.mxu1 %v112_v10 }
  0x1e   :  { %128 = vmatpush.msra.mxu1 %v111_v11 }
  0x20   :  { %129 = vmatpush.msra.mxu1 %v110_v12 }
  0x22   :  { %130 = vmatpush.msra.mxu1 %v109_v13 }
  0x24   :  { %131 = vmatpush.msra.mxu1 %v108_v14 }
  0x26   :  { %132 = vmatpush.msra.mxu1 %v107_v15 }
  0x28   :  { %133 = vmatpush.msra.mxu1 %v106_v16 }
  0x2a   :  { %134 = vmatpush.msra.mxu1 %v105_v17 }
  0x2c   :  { %135 = vmatpush.msra.mxu1 %v104_v18 }
  0x2e   :  { %136 = vmatpush.msra.mxu1 %v103_v19 }
  0x30   :  { %137 = vmatpush.msra.mxu1 %v102_v20 }
  0x95   :  { %v98_v22 = vpop.f32.mrf.mxu0 }
  0x96   :  { %v99_v23 = vadd.f32 %v172_v21, %v98_v22 }
  0x98   :  { %v101_v24 = vmax.f32 %v99_v23, 0.0 }
  0x9a   :  { %138 = vmatmul.f32.vlgmr.msra.gmra.mxu1 %v101_v24 }
 0x117   :  { %v139_v26 = vpop.f32.mrf.mxu1 }
 0x118   :  { %v140_v27 = vadd.f32 %v173_v25, %v139_v26 }
 0x11a   :  { %142 = vst [vmem:[#allocation8] sm:$0xff] %v140_v27 }
 0x11b   :  { %146 = vsyncadd [#allocation4], 96  ;;  %s149_s15 = sshll.u32 %s343_s5, 4  ;;  %s283_s16 = smov [#allocation8]   ;;  %s150_s15 = int_to_ptr.hbm [resolvable:$true] %s149_s15 }
 0x11c   :  { %s147_s17 = sshll.u32 %s283_s16, 4  ;;  %s148_s17 = int_to_ptr.vmem [resolvable:$true] %s147_s17 }
 0x11d   :  { %155 = dma.vmem_to_hbm [thread:$0]  %s148_s17, 32, %s150_s15, [#allocation4], %s280_s30, %s280_s30, %s281_s6  }
 0x11e   :  { %274 = dma.done.wait [#allocation4], 128  }
 0x11f   :  { %275 = vsyncadd [#allocation4], 4294967168 }
 0x120   :  { %160 = vsyncpa [#allocation3], 1 }
 0x121   :  { %161 = vsyncpa [#allocation6], 1 }
 0x122   :  { %162 = vsyncpa [#allocation4], 1 }

</bundles_post_ra>
